<compile_context>
chip_gen: v5e
topology: v5e:2x2
jax: 0.10.0
libtpu: 0.0.40
codegen_flags: <defaults>
</compile_context>

<pallas_src>
import functools

import jax
import jax.numpy as jnp
from jax import lax
from jax.experimental import pallas as pl
from jax.experimental.pallas import tpu as pltpu

LANE = 128  # TPU vreg lane width


def _head_kernel(x_ref, wqkv_ref, o_ref, *, head_pad, approx_recip):
    """One batch element: fused QKV -> causal scores -> softmax -> PV."""
    T = x_ref.shape[1]
    HP = head_pad
    cd = x_ref.dtype                      # MXU operand dtype (f32 or bf16)

    x = x_ref[0]                          # (T, C)
    w = wqkv_ref[...]                     # (C, 3*HP)  [Wq*scale | Wk | Wv]

    # Fused QKV projection on the MXU, f32 accumulation.
    qkv = jnp.dot(x, w, preferred_element_type=jnp.float32)       # (T, 3*HP)

    # Lane-aligned slices (offsets 0 / HP / 2*HP are multiples of 128).
    q = qkv[:, 0 * HP:1 * HP]             # scale already folded into Wq
    k = qkv[:, 1 * HP:2 * HP]
    v = qkv[:, 2 * HP:3 * HP]

    # Scores: contract on the head dim of both operands (A @ B.T orientation,
    # MXU-native for attention; zero-padded head columns contribute nothing).
    wei = lax.dot_general(q.astype(cd), k.astype(cd),
                          (((1,), (1,)), ((), ())),
                          preferred_element_type=jnp.float32)     # (T, T)

    # Causal (lower-triangular) mask.  Large-finite instead of -inf so the
    # kernel stays NaN-safe; exp underflows to exactly 0 after max-subtract.
    row = lax.broadcasted_iota(jnp.int32, (T, T), 0)
    col = lax.broadcasted_iota(jnp.int32, (T, T), 1)
    wei = jnp.where(col <= row, wei, jnp.float32(-1e30))

    # Numerically stable softmax along keys — all math kept in f32
    # (v5e VPU/EUP have no bf16 support).
    wei = wei - jnp.max(wei, axis=-1, keepdims=True)
    p = jnp.exp(wei)
    denom = jnp.sum(p, axis=-1, keepdims=True)
    p = p * pl.reciprocal(denom, approx=approx_recip)

    # Dropout: identity in eval mode (dropout=0.0).
    # PV matmul with compute-dtype operands, f32 accumulation; lane-dense N.
    out = jnp.dot(p.astype(cd), v.astype(cd),
                  preferred_element_type=jnp.float32)             # (T, HP)
    o_ref[0] = out.astype(o_ref.dtype)


def prepare_head_params(w_key, w_query, w_value, *, dtype=jnp.float32):
    """One-time parameter setup (NOT per forward call).

    Returns a fused (C, 3*HP) weight: [Wq * C**-0.5 | Wk | Wv], each segment
    zero-padded to a 128-lane boundary, cast to the MXU operand dtype.
    """
    C, H = w_key.shape
    HP = ((H + LANE - 1) // LANE) * LANE
    scale = jnp.asarray(C, jnp.float32) ** -0.5    # module scales by n_embd**-0.5

    def pad(w):
        return jnp.pad(w, ((0, 0), (0, HP - H)))

    w_qkv = jnp.concatenate([pad(w_query * scale), pad(w_key), pad(w_value)],
                            axis=1)
    return w_qkv.astype(dtype)


def head_forward(x, w_qkv, head_size):
    """x: (B, T, C); w_qkv: fused (C, 3*HP) from prepare_head_params."""
    B, T, C = x.shape
    HP = w_qkv.shape[1] // 3
    x = x.astype(w_qkv.dtype)             # bf16 in production mode: half the DMA bytes
    approx = w_qkv.dtype == jnp.bfloat16  # EUP approx reciprocal at prod tolerance

    kernel = functools.partial(_head_kernel, head_pad=HP, approx_recip=approx)
    out_padded = pl.pallas_call(
        kernel,
        out_shape=jax.ShapeDtypeStruct((B, T, HP), x.dtype),
        grid=(B,),
        in_specs=[
            pl.BlockSpec((1, T, C), lambda b: (b, 0, 0)),       # one batch elt
            pl.BlockSpec((C, 3 * HP), lambda b: (0, 0)),        # weights resident
        ],
        out_specs=pl.BlockSpec((1, T, HP), lambda b: (b, 0, 0)),
        compiler_params=pltpu.CompilerParams(
            dimension_semantics=("parallel",)),                 # megacore on v7x
    )(x, w_qkv)
    return out_padded[:, :, :head_size]


def head_reference(x, w_key, w_query, w_value):
    """Pure-JAX reference mirroring the PyTorch forward (eval mode)."""
    B, T, C = x.shape
    k = x @ w_key
    q = x @ w_query
    v = x @ w_value
    wei = (q @ jnp.swapaxes(k, -2, -1)) * (C ** -0.5)
    tril = jnp.tril(jnp.ones((T, T), dtype=bool))
    wei = jnp.where(tril[None, :, :], wei, -jnp.inf)
    wei = jax.nn.softmax(wei, axis=-1)
    return wei @ v


if __name__ == "__main__":
    # hyper_p: n_embd=32, block_size=8, dropout=0.0; head_size=16
    B, T, C, H = 2, 8, 32, 16

    key = jax.random.PRNGKey(0)
    kx, kk, kq, kv = jax.random.split(key, 4)

    x = jax.random.normal(kx, (B, T, C), dtype=jnp.float32)

    # Deterministic "PyTorch-like" uniform(-1/sqrt(C), 1/sqrt(C)) init,
    # stored as (C, H) so the projection is x @ W.
    bound = 1.0 / jnp.sqrt(jnp.float32(C))
    w_key = jax.random.uniform(kk, (C, H), jnp.float32, -bound, bound)
    w_query = jax.random.uniform(kq, (C, H), jnp.float32, -bound, bound)
    w_value = jax.random.uniform(kv, (C, H), jnp.float32, -bound, bound)

    ref = head_reference(x, w_key, w_query, w_value)

    # Exact f32 mode (reference-tolerance check).
    w_qkv_f32 = prepare_head_params(w_key, w_query, w_value, dtype=jnp.float32)
    out_f32 = jax.block_until_ready(head_forward(x, w_qkv_f32, H))
    assert out_f32.shape == (B, T, H)
    assert jnp.allclose(out_f32, ref, atol=1e-5, rtol=1e-5), (
        f"f32 max abs err {jnp.max(jnp.abs(out_f32 - ref))}")

    # Production mode: bf16 MXU operands, f32 softmax/accumulation.
    w_qkv_bf16 = prepare_head_params(w_key, w_query, w_value, dtype=jnp.bfloat16)
    out_bf16 = jax.block_until_ready(head_forward(x, w_qkv_bf16, H))
    assert out_bf16.shape == (B, T, H)
    assert jnp.allclose(out_bf16.astype(jnp.float32), ref, atol=3e-2, rtol=3e-2), (
        f"bf16 max abs err {jnp.max(jnp.abs(out_bf16.astype(jnp.float32) - ref))}")

    print("KERNEL_OK")
</pallas_src>

<mosaic_0001>
module attributes {stable_mosaic.version = 11 : i64} {
  func.func @_head_kernel(%arg0: i32, %arg1: memref<1x8x32xf32, #tpu.memory_space<vmem>>, %arg2: memref<32x384xf32, #tpu.memory_space<vmem>>, %arg3: memref<1x8x128xf32, #tpu.memory_space<vmem>>) attributes {dimension_semantics = [#tpu.dimension_semantics<parallel>], iteration_bounds = array<i64: 2>, scalar_prefetch = 0 : i64, scratch_operands = 0 : i64, tpu.core_type = #tpu.core_type<tc>, window_params = [{transform_indices = @transform_0, window_bounds = array<i64: 1, 8, 32>}, {pipeline_mode = #tpu.pipeline_mode<synchronous>, transform_indices = @transform_1, window_bounds = array<i64: 32, 384>}, {transform_indices = @transform_2, window_bounds = array<i64: 1, 8, 128>}]} {
    %c0 = arith.constant 0 : index
    %c0_0 = arith.constant 0 : index
    %c0_1 = arith.constant 0 : index
    %0 = vector.load %arg1[%c0, %c0_0, %c0_1] : memref<1x8x32xf32, #tpu.memory_space<vmem>>, vector<1x8x32xf32>
    %1 = vector.shape_cast %0 : vector<1x8x32xf32> to vector<8x32xf32>
    %c0_2 = arith.constant 0 : index
    %c0_3 = arith.constant 0 : index
    %2 = vector.load %arg2[%c0_2, %c0_3] : memref<32x384xf32, #tpu.memory_space<vmem>>, vector<32x384xf32>
    %cst = arith.constant dense<0.000000e+00> : vector<8x384xf32>
    %3 = tpu.matmul %1, %2, %cst {dimension_numbers = #tpu.dot_dimension_numbers<[1], [0], [0], [1], [0, 0, 1, 1], [], []>} : vector<8x32xf32>, vector<32x384xf32>, vector<8x384xf32> -> vector<8x384xf32>
    %4 = vector.extract_strided_slice %3 {offsets = [0, 0], sizes = [8, 128], strides = [1, 1]} : vector<8x384xf32> to vector<8x128xf32>
    %5 = vector.extract_strided_slice %3 {offsets = [0, 128], sizes = [8, 128], strides = [1, 1]} : vector<8x384xf32> to vector<8x128xf32>
    %6 = vector.extract_strided_slice %3 {offsets = [0, 256], sizes = [8, 128], strides = [1, 1]} : vector<8x384xf32> to vector<8x128xf32>
    %cst_4 = arith.constant dense<0.000000e+00> : vector<8x8xf32>
    %7 = tpu.matmul %4, %5, %cst_4 {dimension_numbers = #tpu.dot_dimension_numbers<[1], [1], [0], [0], [0, 0, 1, 0], [], []>} : vector<8x128xf32>, vector<8x128xf32>, vector<8x8xf32> -> vector<8x8xf32>
    %8 = tpu.iota {dimensions = array<i32: 0>} : vector<8x8xi32>
    %9 = tpu.iota {dimensions = array<i32: 1>} : vector<8x8xi32>
    %10 = arith.cmpi sle, %9, %8 : vector<8x8xi32>
    %cst_5 = arith.constant -1.000000e+30 : f32
    %11 = vector.broadcast %cst_5 : f32 to vector<8x8xf32>
    %12 = arith.select %10, %7, %11 : vector<8x8xi1>, vector<8x8xf32>
    %cst_6 = arith.constant dense<0xFF800000> : vector<8xf32>
    %13 = vector.multi_reduction <maximumf>, %12, %cst_6 [1] : vector<8x8xf32> to vector<8xf32>
    %14 = vector.shape_cast %13 : vector<8xf32> to vector<8x1xf32>
    %15 = vector.broadcast %14 : vector<8x1xf32> to vector<8x8xf32>
    %16 = arith.subf %12, %15 : vector<8x8xf32>
    %17 = math.exp %16 : vector<8x8xf32>
    %cst_7 = arith.constant dense<0.000000e+00> : vector<8xf32>
    %18 = vector.multi_reduction <add>, %17, %cst_7 [1] : vector<8x8xf32> to vector<8xf32>
    %19 = vector.shape_cast %18 : vector<8xf32> to vector<8x1xf32>
    %20 = tpu.reciprocal %19 : vector<8x1xf32> -> vector<8x1xf32>
    %21 = vector.broadcast %20 : vector<8x1xf32> to vector<8x8xf32>
    %22 = arith.mulf %17, %21 : vector<8x8xf32>
    %cst_8 = arith.constant dense<0.000000e+00> : vector<8x128xf32>
    %23 = tpu.matmul %22, %6, %cst_8 {dimension_numbers = #tpu.dot_dimension_numbers<[1], [0], [0], [1], [0, 0, 1, 1], [], []>} : vector<8x8xf32>, vector<8x128xf32>, vector<8x128xf32> -> vector<8x128xf32>
    %c0_9 = arith.constant 0 : index
    %c0_10 = arith.constant 0 : index
    %c0_11 = arith.constant 0 : index
    %24 = vector.load %arg3[%c0_9, %c0_10, %c0_11] : memref<1x8x128xf32, #tpu.memory_space<vmem>>, vector<1x8x128xf32>
    %25 = vector.shape_cast %24 : vector<1x8x128xf32> to vector<8x128xf32>
    %26 = vector.shape_cast %23 : vector<8x128xf32> to vector<1x8x128xf32>
    tpu.vector_store %arg3[%c0_9, %c0_10, %c0_11], %26 {strides = array<i32>} : memref<1x8x128xf32, #tpu.memory_space<vmem>>, vector<1x8x128xf32>,
    return
  }
  func.func @transform_0(%arg0: i32) -> (i32, i32, i32) {
    %c0_i32 = arith.constant 0 : i32
    %c0_i32_0 = arith.constant 0 : i32
    %c0_i32_1 = arith.constant 0 : i32
    return %arg0, %c0_i32, %c0_i32_0 : i32, i32, i32
  }
  func.func @transform_1(%arg0: i32) -> (i32, i32) {
    %c0_i32 = arith.constant 0 : i32
    %c0_i32_0 = arith.constant 0 : i32
    %c0_i32_1 = arith.constant 0 : i32
    return %c0_i32, %c0_i32_0 : i32, i32
  }
  func.func @transform_2(%arg0: i32) -> (i32, i32, i32) {
    %c0_i32 = arith.constant 0 : i32
    %c0_i32_0 = arith.constant 0 : i32
    %c0_i32_1 = arith.constant 0 : i32
    return %arg0, %c0_i32, %c0_i32_0 : i32, i32, i32
  }
}

</mosaic_0001>

<bundles_post_ra>
// kernel: tpu_custom_call.1
= control target key start
LH: loop header
LB: loop body
LE: loop exit
PB: predicated region body
PF: predicated region fallthrough
CT: control target
= control target key end

     0   :  { %7 = vsyncpa [#allocation3], 0  ;;  %s803_s0 = inlined_call_operand.hbm [shape: f32[2,8,32], index: 0, kind: input, shape index: {}]   ;;  %s804_s1 = inlined_call_operand.hbm [shape: f32[32,384], index: 1, kind: input, shape index: {}]   ;;  %s805_s2 = inlined_call_operand.hbm [shape: f32[2,8,128], index: 2, kind: output, shape index: {}]  }
   0x1   :  { %9 = vsyncpa [#allocation3 + $0x1], 0 }
   0x2   :  { %10 = vsyncpa [#allocation6], 0 }
   0x3   :  { %11 = vsyncpa [#allocation4], 0 }
   0x4   :  { %13 = vsyncpa [#allocation4 + $0x1], 0  ;;  %s657_s9 = smov 0   ;;  %s659_s10 = smov 0  }
   0x5   :  { %s661_s11 = smov 0   ;;  %s663_s12 = smov 0  }
   0x6 LB: > { %s108_s15 = sshll.u32 %s804_s1, 4  ;;  %s681_s16 = sadd.s32 4294967295, %s637_s12   ;;  %s637_s12 = sphi %s663_s12, %s815_s12   ;;  %s633_s11 = sphi %s661_s11, %s814_s11   ;;  %s629_s10 = sphi %s659_s10, %s813_s10   ;;  %s625_s9 = sphi %s657_s9, %s812_s9   ;;  %s109_s15 = int_to_ptr.hbm [resolvable:$true] %s108_s15 }
   0x7   : > { %p427_p0 = scmp.ge.s32.totalorder %s637_s12, 1  ;;  %p40_p1 = scmp.eq.s32.totalorder %s681_s16, 0 }
   0x8   : > { %p97_p2 = scmp.lt.s32.totalorder %s637_s12, 3  ;;  %s639_s18 = smov [#allocation5]  }
   0x9   : > { %s110_s19 = sshll.u32 %s639_s18, 4  ;;  %s640_s20 = smov 384   ;;  %s111_s19 = int_to_ptr.vmem [resolvable:$true] %s110_s19 }
   0xa   : > { %p686_p3 = pnand %p427_p0, %p97_p2  ;;  %s641_s21 = smov 24  }
   0xb   : > { %s426_s22 = sadd.s32 4294967294, %s637_s12   ;;  %s697_s23 = sadd.s32 1, %s637_s12  }
   0xc   : > { %p452_p4 = pneg %p686_p3  ;;  %s26_s24 = sadd.s32 1, %s633_s11 }
   0xd   : > { %s23_s25 = ssub.s32 %s637_s12, %s697_s23  ;;  %p33_p7 = scmp.ne.s32.totalorder %s633_s11, %s629_s10 }
   0xe   : > { %p453_p6 = pnand %p452_p4, %p40_p1  ;;  %p24_p8 = scmp.eq.s32.totalorder %s23_s25, 0 }
   0xf   : > { %p34_p9 = scmp.eq.s32.totalorder %s637_s12, 0  ;;  %p39_p10 = scmp.ne.s32.totalorder %s629_s10, %s625_s9 }
  0x10   : > { %455 = dma.hbm_to_vmem [thread:$0]  (!%p453_p6), %s109_s15, 1536, %s111_s19, [#allocation6], %s640_s20, %s640_s20, %s641_s21  }
  0x11   : > { %p84_p11 = scmp.eq.s32.totalorder %s681_s16, 1  ;;  %p713_p12 = por %p40_p1, %p39_p10 }
  0x12   : > { %s709_s26 = scalar_select %p24_p8, %s633_s11, %s26_s24  }
  0x13   : > { %p717_p13 = por %p84_p11, %p33_p7  ;;  %p90_p0 = scmp.eq.s32.totalorder %s426_s22, 1 }
  0x14   : > { %p35_p2 = por %p34_p9, %p33_p7  ;;  %s124_s29 = sand.u32 1, %s633_s11  }
  0x15   : > { %p722_p4 = por %p90_p0, %p39_p10  ;;  %p465_p6 = scmp.lt.s32.totalorder %s637_s12, 2 }
  0x16   : > { %s430_s3 = sshll.u32 %s124_s29, 3  ;;  %s431_s4 = sshll.u32 %s637_s12, 3 }
  0x17   : > { %s132_s7 = scalar_lea.hbm %s803_s0, %s431_s4  ;;  %s128_s13 = scalar_lea.vmem [#allocation2], %s430_s3 }
  0x18   : > { %s134_s8 = sshll.u32 %s132_s7, 4  ;;  %s136_s14 = sshll.u32 %s128_s13, 4  ;;  %s135_s8 = int_to_ptr.hbm [resolvable:$true] %s134_s8  ;;  %s137_s14 = int_to_ptr.vmem [resolvable:$true] %s136_s14 }
  0x19   : > { %p731_p8 = pnand %p465_p6, %p35_p2  ;;  %s125_s18 = scalar_lea.sflag [#allocation3], %s124_s29 }
  0x1a   : > { %s537_s19 = sshra.s32 %s135_s8, 4  ;;  %s544_s24 = scalar_lea.hbm %s803_s0, 16  ;;  %s538_s19 = int_to_ptr.hbm [resolvable:$true] %s537_s19 }
  0x1b   : > { %s539_s20 = scalar_lea.hbm %s538_s19, 8  ;;  %p541_p9 = pneg %p731_p8 }
  0x1c   : > { %p540_p7 = scmp.ne.s32.totalorder %s538_s19, %s539_s20  ;;  %p545_p0 = scmp.lt.s32.totalorder %s538_s19, %s803_s0 }
  0x1d   : > { %p546_p2 = scmp.lt.s32.totalorder %s544_s24, %s539_s20 }
  0x1e   : > { %p542_p10 = pnand %p541_p9, %p540_p7 }
  0x1f   : > { %p547_p6 = por %p546_p2, %p545_p0 }
  0x20   : > { %p543_p11 = pneg %p542_p10 }
  0x22   : > { %p548_p5 = pnand %p547_p6, %p543_p11 }
  0x24   : > { %551 = shalt.err (!%p548_p5)
}
  0x25   : > { %459 = dma.hbm_to_vmem [thread:$0]  (!%p731_p8), %s135_s8, 128, %s137_s14, %s125_s18  }
  0x26   : > { %145 = sbr.rel (%p686_p3) target bundleno = 715 (0x2cb), region = 28  ;;  %s748_s29 = sand.u32 (!%p686_p3), 1, %s629_s10  }
  0x27   : > { %s433_s4 = sshll.u32 (!%p686_p3), %s748_s29, 3  ;;  %s148_s5 = scalar_lea.sflag (!%p686_p3), [#allocation3], %s748_s29 }
  0x28   : > { %s151_s6 = scalar_lea.vmem (!%p686_p3), [#allocation2], %s433_s4 }
  0x2b   : > { %612 = dma.done.wait (%p713_p12), %s148_s5, 128  }
  0x2c   : > { %614 = vsyncadd (%p713_p12), %s148_s5, 4294967168 }
  0x2d   : > { %616 = dma.done.wait (%p40_p1), [#allocation6], 1536  }
  0x2e   : > { %618 = vsyncadd (%p40_p1), [#allocation6], 4294965760  ;;  %v189_v0 = vld [vmem:[#allocation5 + $0x50] sm:$0xff]  ;;  %v186_v1 = vld [vmem:[#allocation5 + $0x38] sm:$0xff]  ;;  %vm191_vm0 = vcmask 261120   ;;  %v275_v11 = vlaneseq  ;;  %vm281_vm2 = vcmask 64512  }
  0x2f   : > { %v188_v2 = vld [vmem:[#allocation5 + $0x48] sm:$0xff]  ;;  %227 = vmatpush.msra.mxu1 %v189_v0  ;;  %v185_v3 = vld [vmem:[#allocation5 + $0x30] sm:$0xff]  ;;  %v183_v4 = vld [vmem:[#allocation5 + $0x20] sm:$0xff]  ;;  %s441_s17 = sshll.u32 %s681_s16, 3  ;;  %s177_s13 = scalar_lea.vmem [#allocation7], %s433_s4 }
  0x30   : > { %207 = vmatpush.msra.mxu0 %v188_v2  ;;  %v182_v5 = vld [vmem:[#allocation5 + $0x18] sm:$0xff]  ;;  %v180_v6 = vld [vmem:[#allocation5 + $0x8] sm:$0xff]  ;;  %v179_v7 = vld [vmem:[#allocation5] sm:$0xff]  ;;  %v276_v12 = vshrl.u32 %v275_v11, 7  ;;  %v278_v13 = vand.u32 127, %v275_v11  ;;  %s341_s8 = scalar_lea.hbm %s805_s2, %s441_s17  ;;  %s343_s14 = sshll.u32 %s177_s13, 4  ;;  %s344_s14 = int_to_ptr.vmem [resolvable:$true] %s343_s14 }
  0x31   : > { %228 = vmatpush.msra.mxu1 %v186_v1  ;;  %v178_v8 = vld [vmem:[%s151_s6] sm:$0xff]  ;;  %v187_v18 = vld [vmem:[#allocation5 + $0x40] sm:$0xff]  ;;  %v184_v19 = vld [vmem:[#allocation5 + $0x28] sm:$0xff]  ;;  %s345_s15 = sshll.u32 %s341_s8, 4  ;;  %s331_s18 = scalar_lea.sflag [#allocation4], %s748_s29  ;;  %s346_s15 = int_to_ptr.hbm [resolvable:$true] %s345_s15 }
  0x32   : > { %208 = vmatpush.msra.mxu0 %v185_v3  ;;  %vm279_vm1 = vcmp.le.s32.totalorder %v278_v13, %v276_v12  ;;  %v190_v17 = vld [vmem:[#allocation5 + $0x58] sm:$0xff]  ;;  %v181_v20 = vld [vmem:[#allocation5 + $0x10] sm:$0xff]  ;;  %s581_s19 = sshra.s32 %s346_s15, 4  ;;  %s587_s22 = scalar_lea.hbm %s805_s2, 16  ;;  %s582_s19 = int_to_ptr.hbm [resolvable:$true] %s581_s19 }
  0x33   : > { %229 = vmatpush.msra.mxu1 %v183_v4  ;;  %247 = vmatpush.msra.mxu2 %v190_v17  ;;  %s583_s20 = scalar_lea.hbm %s582_s19, 8  ;;  %p588_p12 = scmp.lt.s32.totalorder %s582_s19, %s805_s2 }
  0x34   : > { %209 = vmatpush.msra.mxu0 %v182_v5  ;;  %p584_p1 = scmp.ne.s32.totalorder %s582_s19, %s583_s20  ;;  %p589_p8 = scmp.lt.s32.totalorder %s587_s22, %s583_s20 }
  0x35   : > { %230 = vmatpush.msra.mxu1 %v180_v6  ;;  %248 = vmatpush.msra.mxu2 %v187_v18 }
  0x36   : > { %210 = vmatpush.msra.mxu0 %v179_v7  ;;  %437 = vmatmul.msk.f32.vlgmr.msra.gmra.mxu1 %vm191_vm0, %v178_v8  ;;  %p585_p3 = pnand %p584_p1, %p717_p13  ;;  %p590_p7 = por %p589_p8, %p588_p12 }
  0x37   : > { %436 = vmatmul.msk.f32.vlgmr.msra.gmra.mxu0 %vm191_vm0, %v178_v8  ;;  %249 = vmatpush.msra.mxu2 %v184_v19 }
  0x38   : > { %p586_p5 = pneg %p585_p3 }
  0x39   : > { %250 = vmatpush.msra.mxu2 %v181_v20 }
  0x3a   : > { %438 = vmatmul.msk.f32.vlgmr.msra.gmra.mxu2 %vm191_vm0, %v178_v8  ;;  %p591_p9 = pnand %p590_p7, %p586_p5 }
  0xb3   : > { %v232_v9 = vpop.f32.mrf.mxu1 }
  0xb4   : > { %270 = vmatpush.xpose.msra.mxu3 %v232_v9  ;;  %v212_v10 = vpop.f32.mrf.mxu0 }
  0xb7   : > { %271 = vmatmul.f32.vlgmr.msra.gmra.mxu3 %v212_v10 }
  0xbd   : > { %v252_v26 = vpop.f32.mrf.mxu2 }
  0xbe   : > { %324 = vmatpush.msrb.mxu3 %v252_v26 }
 0x13a   : > { %v272_v14 = vpop.f32.mrf.mxu3 }
 0x13b   : > { %v280_v15 = vsel %vm279_vm1, %v272_v14, -1e+30 }
 0x13c   : > { %v282_v16 = vsel %vm281_vm2, %v280_v15, -inf }
 0x13d   : > { %283 = vmax.xlane.f32.xlu0 %v282_v16 }
 0x1b0   : > { %v284_v21 = vpop.xlane.xlu0 %283 }
 0x1b1   : > { %v285_v22 = vsub.f32 %v280_v15, %v284_v21 }
 0x1b3   : > { %v286_v23 = vmul.f32 1.442695, %v285_v22 }
 0x1b5   : > { %503 = vpow2.f32 %v286_v23 }
 0x1bb   : > { %v504_v24 = vpop.eup %503 }
 0x1bc   : > { %v288_v25 = vsel %vm281_vm2, %v504_v24, 0.0 }
 0x1bd   : > { %289 = vadd.xlane.f32.xlu0 %v288_v25 }
 0x230   : > { %v290_v27 = vpop.xlane.xlu0 %289 }
 0x231   : > { %505 = vrcp.f32 %v290_v27  ;;  %v302_v31 = vand.u32 2147483648, %v290_v27  ;;  %v300_v33 = vand.u32 2147483647, %v290_v27  ;;  %vm296_vm4 = vweird.f32 %v290_v27 }
 0x233   : > { %v303_v35 = vor.u32 1.1754944e-38, %v302_v31  ;;  %vm301_vm6 = vcmp.eq.f32.partialorder %v300_v33, 8.507059e+37 }
 0x237   : > { %v506_v28 = vpop.eup %505 }
 0x238   : > { %v292_v29 = vmul.f32 %v506_v28, %v290_v27  ;;  %vm297_vm3 = vweird.f32 %v506_v28 }
 0x239   : > { %vm298_vm5 = vmor %vm296_vm4, %vm297_vm3 }
 0x23a   : > { %v293_v30 = vsub.f32 1.0, %v292_v29 }
 0x23c   : > { %v294_v32 = vmul.f32 %v506_v28, %v293_v30 }
 0x23e   : > { %v295_v34 = vadd.f32 %v506_v28, %v294_v32 }
 0x240   : > { %v299_v36 = vsel %vm298_vm5, %v506_v28, %v295_v34 }
 0x241   : > { %v304_v37 = vsel %vm301_vm6, %v303_v35, %v299_v36 }
 0x242   : > { %v305_v38 = vmul.f32 %v504_v24, %v304_v37 }
 0x244   : > { %439 = vmatmul.msk.f32.vlgmr.msrb.gmra.mxu3 %vm281_vm2, %v305_v38 }
 0x2c7   : > { %v326_v39 = vpop.f32.mrf.mxu3 }
 0x2c8   : > { %329 = vst [vmem:[%s177_s13] sm:$0xff] %v326_v39 }
 0x2c9   : > { %594 = shalt.err (!%p591_p9)
}
 0x2ca   : > { %450 = dma.vmem_to_hbm [thread:$0]  (%p717_p13), %s344_s14, 128, %s346_s15, %s331_s18  }
 0x2cb PF: > { %s357_s3 = sand.u32 1, %s625_s9   ;;  %p811_p10 = scmp.ge.s32.totalorder %s637_s12, 2 }
 0x2cc   : > { %s358_s29 = scalar_lea.sflag [#allocation4], %s357_s3 }
 0x2cd   : > { %p461_p11 = pnand %p811_p10, %p722_p4 }
 0x2cf   : > { %p462_p0 = pneg %p461_p11 }
 0x2d1   : > { %620 = dma.done.wait (%p462_p0), %s358_s29, 128  }
 0x2d2   : > { %622 = vsyncadd (%p462_p0), %s358_s29, 4294967168  ;;  %p16_p2 = scmp.ge.s32.totalorder %s697_s23, 4   ;;  %s812_s9 = smov %s629_s10 }
 0x2d3   : > { %s813_s10 = smov %s633_s11  ;;  %s814_s11 = smov %s709_s26 }
 0x2d4   : > { %s815_s12 = smov %s697_s23  ;;  %18 = sbr.rel (!%p16_p2) target bundleno = 6 (0x6), region = 77 }
 0x2d9   :  { %364 = vsyncpa [#allocation3], 1 }
 0x2da   :  { %366 = vsyncpa [#allocation3 + $0x1], 1 }
 0x2db   :  { %367 = vsyncpa [#allocation6], 1 }
 0x2dc   :  { %368 = vsyncpa [#allocation4], 1 }
 0x2dd   :  { %370 = vsyncpa [#allocation4 + $0x1], 1 }

</bundles_post_ra>
